<compile_context>
chip_gen: v7x
topology: tpu7x:2x2x1
jax: 0.10.0
libtpu: 0.0.40
codegen_flags: <defaults>
</compile_context>

<pallas_src>
import jax
import jax.numpy as jnp
from jax.experimental import pallas as pl
from jax.experimental.pallas import tpu as pltpu


def complex_conv2d(x, wr, wi, br, bi):
    """x: complex64 (N, IC, H, W); wr/wi: (OC, IC, KH, KW); br/bi: (OC,).

    Matches ComplexConv2d with stride=1, padding=0, dilation=1, groups=1.
    Returns complex64 (N, OC, OH, OW).
    """
    N, IC, H, W = x.shape
    OC, _, KH, KW = wr.shape
    OH = H - KH + 1
    OW = W - KW + 1
    C2 = 2 * IC                 # concatenated [real | imag] input channels
    R2 = 2 * OC                 # output rows: [real outputs | imag outputs]
    OHW = OH * W                # full-width output columns; ow >= OW discarded later
    LP = (H + KH - 1) * W       # padded flat spatial length so every tap slice is in-bounds

    xr = jnp.real(x).astype(jnp.float32)
    xi = jnp.imag(x).astype(jnp.float32)

    # Cheap wrapper-side layout: concat channels, zero-pad KH-1 rows at the bottom,
    # flatten (H, W) -> H*W (a bitcast). ~1x input bytes of traffic, no transposes.
    xc = jnp.concatenate([xr, xi], axis=1)                       # (N, 2*IC, H, W)
    xc = jnp.pad(xc, ((0, 0), (0, 0), (0, KH - 1), (0, 0)))      # (N, 2*IC, H+KH-1, W)
    x_flat = xc.reshape(N, C2, LP)                               # (N, 2*IC, LP)

    # Block-complex weight packed per-tap: column block k = kh*KW + kw holds
    #   [[ Wr[..,kh,kw], -Wi[..,kh,kw] ],
    #    [ Wi[..,kh,kw],  Wr[..,kh,kw] ]]        -> (2*OC, 2*IC)
    wr_f = wr.astype(jnp.float32)
    wi_f = wi.astype(jnp.float32)
    chunks = []
    for kh in range(KH):
        for kw in range(KW):
            wrk = wr_f[:, :, kh, kw]
            wik = wi_f[:, :, kh, kw]
            top = jnp.concatenate([wrk, -wik], axis=1)           # real = Wr@xr - Wi@xi
            bot = jnp.concatenate([wik, wrk], axis=1)            # imag = Wi@xr + Wr@xi
            chunks.append(jnp.concatenate([top, bot], axis=0))   # (2*OC, 2*IC)
    w_blk = jnp.concatenate(chunks, axis=1)                      # (2*OC, KH*KW*2*IC)

    # Pre-fused bias column: real rows get (br - bi), imag rows get (br + bi).
    b_col = jnp.concatenate([br - bi, br + bi]).astype(jnp.float32).reshape(R2, 1)

    def kernel(w_ref, b_ref, x_ref, o_ref):
        # w: (2*OC, KH*KW*2*IC)  b: (2*OC, 1)  x: (1, 2*IC, LP)  o: (1, 2*OC, OH*W)
        # Fused im2col: tap (kh, kw) is the constant-offset lane slice starting at
        # kh*W + kw of the flattened input; invalid columns (ow >= OW) land only in
        # the last KW-1 output columns, which the wrapper discards.
        acc = jnp.zeros((R2, OHW), jnp.float32)
        for kh in range(KH):                      # Python-unrolled: static slices only
            for kw in range(KW):
                k = kh * KW + kw
                d = kh * W + kw
                wk = w_ref[:, k * C2:(k + 1) * C2]        # (2*OC, 2*IC)
                xk = x_ref[0, :, d:d + OHW]               # (2*IC, OH*W)
                acc = acc + jnp.dot(wk, xk, preferred_element_type=jnp.float32)
        o_ref[0] = acc + b_ref[...]                       # bias broadcast over lanes

    flops = 2 * N * KH * KW * R2 * C2 * OHW
    bytes_accessed = 4 * (x_flat.size + w_blk.size + b_col.size + N * R2 * OHW)

    # TODO(synk): for large N*OH*OW or OC/IC, tile the OH*W (lane) axis in multiples
    # of 128 (512 preferred) and accumulate K in MXU-sized chunks; size tiles against
    # v7x's 64 MiB VMEM (half of v5e/v6e) and consider bf16 MXU inputs on v6e/v7x.
    out_full = pl.pallas_call(
        kernel,
        out_shape=jax.ShapeDtypeStruct((N, R2, OHW), jnp.float32),
        grid=(N,),
        in_specs=[
            pl.BlockSpec((R2, KH * KW * C2), lambda n: (0, 0)),   # weight stays resident
            pl.BlockSpec((R2, 1), lambda n: (0, 0)),              # bias stays resident
            pl.BlockSpec((1, C2, LP), lambda n: (n, 0, 0)),       # per-sample input slab
        ],
        out_specs=pl.BlockSpec((1, R2, OHW), lambda n: (n, 0, 0)),  # lane-dense stores
        compiler_params=pltpu.CompilerParams(
            dimension_semantics=("parallel",)),    # shards N across both TCs on v7x
        cost_estimate=pl.CostEstimate(
            flops=flops, transcendentals=0, bytes_accessed=bytes_accessed),
    )(w_blk, b_col, x_flat)

    # (N, 2*OC, OH*W) -> (N, 2, OC, OH, W): bitcast reshape; drop the KW-1 invalid
    # full-width columns; split real/imag by leading-axis slice. No transposes.
    out = out_full.reshape(N, 2, OC, OH, W)[..., :OW]
    return jax.lax.complex(out[:, 0], out[:, 1])          # complex64, NCHW


if __name__ == "__main__":
    key = jax.random.PRNGKey(0)
    N, IC, H, W = 2, 4, 16, 16
    OC, KH, KW = 8, 3, 3

    k0, k1, k2, k3, k4, k5 = jax.random.split(key, 6)
    fan_in = IC * KH * KW
    bound = 1.0 / (fan_in ** 0.5)  # PyTorch Conv2d default init range

    wr = jax.random.uniform(k0, (OC, IC, KH, KW), jnp.float32, -bound, bound)
    wi = jax.random.uniform(k1, (OC, IC, KH, KW), jnp.float32, -bound, bound)
    br = jax.random.uniform(k2, (OC,), jnp.float32, -bound, bound)
    bi = jax.random.uniform(k3, (OC,), jnp.float32, -bound, bound)

    xr = jax.random.normal(k4, (N, IC, H, W), jnp.float32)
    xi = jax.random.normal(k5, (N, IC, H, W), jnp.float32)
    x = jax.lax.complex(xr, xi)

    out = jax.block_until_ready(complex_conv2d(x, wr, wi, br, bi))

    # Reference check against XLA convolutions with identical semantics.
    dn = jax.lax.conv_dimension_numbers(xr.shape, wr.shape, ("NCHW", "OIHW", "NCHW"))

    def conv(a, w, b):
        y = jax.lax.conv_general_dilated(a, w, (1, 1), "VALID", dimension_numbers=dn)
        return y + b[None, :, None, None]

    ref_real = conv(xr, wr, br) - conv(xi, wi, bi)
    ref_imag = conv(xi, wr, br) + conv(xr, wi, bi)
    assert out.shape == (N, OC, H - KH + 1, W - KW + 1) and out.dtype == jnp.complex64
    assert jnp.allclose(jnp.real(out), ref_real, atol=1e-4, rtol=1e-4)
    assert jnp.allclose(jnp.imag(out), ref_imag, atol=1e-4, rtol=1e-4)

    # Mirror apply_complex's NaN/Inf guard (host-side).
    # TODO(synk): raising from inside the kernel on data-dependent NaN/Inf is not expressible.
    if bool(jnp.any(jnp.isnan(out)) | jnp.any(jnp.isinf(out))):
        raise ValueError("NaN or infinite value detected in complex output")

    print("KERNEL_OK")
</pallas_src>

<mosaic_0001>
module attributes {stable_mosaic.version = 11 : i64} {
  func.func @kernel(%arg0: i32, %arg1: memref<16x72xf32, #tpu.memory_space<vmem>>, %arg2: memref<16x1xf32, #tpu.memory_space<vmem>>, %arg3: memref<1x8x288xf32, #tpu.memory_space<vmem>>, %arg4: memref<1x16x224xf32, #tpu.memory_space<vmem>>) attributes {dimension_semantics = [#tpu.dimension_semantics<parallel>], iteration_bounds = array<i64: 2>, scalar_prefetch = 0 : i64, scratch_operands = 0 : i64, tpu.core_type = #tpu.core_type<tc>, window_params = [{pipeline_mode = #tpu.pipeline_mode<synchronous>, transform_indices = @transform_0, window_bounds = array<i64: 16, 72>}, {pipeline_mode = #tpu.pipeline_mode<synchronous>, transform_indices = @transform_1, window_bounds = array<i64: 16, 1>}, {transform_indices = @transform_2, window_bounds = array<i64: 1, 8, 288>}, {transform_indices = @transform_3, window_bounds = array<i64: 1, 16, 224>}]} {
    %cst = arith.constant 0.000000e+00 : f32
    %0 = vector.broadcast %cst : f32 to vector<16x224xf32>
    %c0 = arith.constant 0 : index
    %c0_0 = arith.constant 0 : index
    %1 = vector.load %arg1[%c0, %c0_0] : memref<16x72xf32, #tpu.memory_space<vmem>>, vector<16x8xf32>
    %c0_1 = arith.constant 0 : index
    %c0_2 = arith.constant 0 : index
    %c0_3 = arith.constant 0 : index
    %2 = vector.load %arg3[%c0_1, %c0_2, %c0_3] : memref<1x8x288xf32, #tpu.memory_space<vmem>>, vector<1x8x224xf32>
    %3 = vector.shape_cast %2 : vector<1x8x224xf32> to vector<8x224xf32>
    %cst_4 = arith.constant dense<0.000000e+00> : vector<16x224xf32>
    %4 = tpu.matmul %1, %3, %cst_4 {dimension_numbers = #tpu.dot_dimension_numbers<[1], [0], [0], [1], [0, 0, 1, 1], [], []>} : vector<16x8xf32>, vector<8x224xf32>, vector<16x224xf32> -> vector<16x224xf32>
    %5 = arith.addf %0, %4 : vector<16x224xf32>
    %c0_5 = arith.constant 0 : index
    %c8 = arith.constant 8 : index
    %6 = vector.load %arg1[%c0_5, %c8] : memref<16x72xf32, #tpu.memory_space<vmem>>, vector<16x8xf32>
    %c0_6 = arith.constant 0 : index
    %c0_7 = arith.constant 0 : index
    %c1 = arith.constant 1 : index
    %7 = vector.load %arg3[%c0_6, %c0_7, %c1] : memref<1x8x288xf32, #tpu.memory_space<vmem>>, vector<1x8x224xf32>
    %8 = vector.shape_cast %7 : vector<1x8x224xf32> to vector<8x224xf32>
    %cst_8 = arith.constant dense<0.000000e+00> : vector<16x224xf32>
    %9 = tpu.matmul %6, %8, %cst_8 {dimension_numbers = #tpu.dot_dimension_numbers<[1], [0], [0], [1], [0, 0, 1, 1], [], []>} : vector<16x8xf32>, vector<8x224xf32>, vector<16x224xf32> -> vector<16x224xf32>
    %10 = arith.addf %5, %9 : vector<16x224xf32>
    %c0_9 = arith.constant 0 : index
    %c16 = arith.constant 16 : index
    %11 = vector.load %arg1[%c0_9, %c16] : memref<16x72xf32, #tpu.memory_space<vmem>>, vector<16x8xf32>
    %c0_10 = arith.constant 0 : index
    %c0_11 = arith.constant 0 : index
    %c2 = arith.constant 2 : index
    %12 = vector.load %arg3[%c0_10, %c0_11, %c2] : memref<1x8x288xf32, #tpu.memory_space<vmem>>, vector<1x8x224xf32>
    %13 = vector.shape_cast %12 : vector<1x8x224xf32> to vector<8x224xf32>
    %cst_12 = arith.constant dense<0.000000e+00> : vector<16x224xf32>
    %14 = tpu.matmul %11, %13, %cst_12 {dimension_numbers = #tpu.dot_dimension_numbers<[1], [0], [0], [1], [0, 0, 1, 1], [], []>} : vector<16x8xf32>, vector<8x224xf32>, vector<16x224xf32> -> vector<16x224xf32>
    %15 = arith.addf %10, %14 : vector<16x224xf32>
    %c0_13 = arith.constant 0 : index
    %c24 = arith.constant 24 : index
    %16 = vector.load %arg1[%c0_13, %c24] : memref<16x72xf32, #tpu.memory_space<vmem>>, vector<16x8xf32>
    %c0_14 = arith.constant 0 : index
    %c0_15 = arith.constant 0 : index
    %c16_16 = arith.constant 16 : index
    %17 = vector.load %arg3[%c0_14, %c0_15, %c16_16] : memref<1x8x288xf32, #tpu.memory_space<vmem>>, vector<1x8x224xf32>
    %18 = vector.shape_cast %17 : vector<1x8x224xf32> to vector<8x224xf32>
    %cst_17 = arith.constant dense<0.000000e+00> : vector<16x224xf32>
    %19 = tpu.matmul %16, %18, %cst_17 {dimension_numbers = #tpu.dot_dimension_numbers<[1], [0], [0], [1], [0, 0, 1, 1], [], []>} : vector<16x8xf32>, vector<8x224xf32>, vector<16x224xf32> -> vector<16x224xf32>
    %20 = arith.addf %15, %19 : vector<16x224xf32>
    %c0_18 = arith.constant 0 : index
    %c32 = arith.constant 32 : index
    %21 = vector.load %arg1[%c0_18, %c32] : memref<16x72xf32, #tpu.memory_space<vmem>>, vector<16x8xf32>
    %c0_19 = arith.constant 0 : index
    %c0_20 = arith.constant 0 : index
    %c17 = arith.constant 17 : index
    %22 = vector.load %arg3[%c0_19, %c0_20, %c17] : memref<1x8x288xf32, #tpu.memory_space<vmem>>, vector<1x8x224xf32>
    %23 = vector.shape_cast %22 : vector<1x8x224xf32> to vector<8x224xf32>
    %cst_21 = arith.constant dense<0.000000e+00> : vector<16x224xf32>
    %24 = tpu.matmul %21, %23, %cst_21 {dimension_numbers = #tpu.dot_dimension_numbers<[1], [0], [0], [1], [0, 0, 1, 1], [], []>} : vector<16x8xf32>, vector<8x224xf32>, vector<16x224xf32> -> vector<16x224xf32>
    %25 = arith.addf %20, %24 : vector<16x224xf32>
    %c0_22 = arith.constant 0 : index
    %c40 = arith.constant 40 : index
    %26 = vector.load %arg1[%c0_22, %c40] : memref<16x72xf32, #tpu.memory_space<vmem>>, vector<16x8xf32>
    %c0_23 = arith.constant 0 : index
    %c0_24 = arith.constant 0 : index
    %c18 = arith.constant 18 : index
    %27 = vector.load %arg3[%c0_23, %c0_24, %c18] : memref<1x8x288xf32, #tpu.memory_space<vmem>>, vector<1x8x224xf32>
    %28 = vector.shape_cast %27 : vector<1x8x224xf32> to vector<8x224xf32>
    %cst_25 = arith.constant dense<0.000000e+00> : vector<16x224xf32>
    %29 = tpu.matmul %26, %28, %cst_25 {dimension_numbers = #tpu.dot_dimension_numbers<[1], [0], [0], [1], [0, 0, 1, 1], [], []>} : vector<16x8xf32>, vector<8x224xf32>, vector<16x224xf32> -> vector<16x224xf32>
    %30 = arith.addf %25, %29 : vector<16x224xf32>
    %c0_26 = arith.constant 0 : index
    %c48 = arith.constant 48 : index
    %31 = vector.load %arg1[%c0_26, %c48] : memref<16x72xf32, #tpu.memory_space<vmem>>, vector<16x8xf32>
    %c0_27 = arith.constant 0 : index
    %c0_28 = arith.constant 0 : index
    %c32_29 = arith.constant 32 : index
    %32 = vector.load %arg3[%c0_27, %c0_28, %c32_29] : memref<1x8x288xf32, #tpu.memory_space<vmem>>, vector<1x8x224xf32>
    %33 = vector.shape_cast %32 : vector<1x8x224xf32> to vector<8x224xf32>
    %cst_30 = arith.constant dense<0.000000e+00> : vector<16x224xf32>
    %34 = tpu.matmul %31, %33, %cst_30 {dimension_numbers = #tpu.dot_dimension_numbers<[1], [0], [0], [1], [0, 0, 1, 1], [], []>} : vector<16x8xf32>, vector<8x224xf32>, vector<16x224xf32> -> vector<16x224xf32>
    %35 = arith.addf %30, %34 : vector<16x224xf32>
    %c0_31 = arith.constant 0 : index
    %c56 = arith.constant 56 : index
    %36 = vector.load %arg1[%c0_31, %c56] : memref<16x72xf32, #tpu.memory_space<vmem>>, vector<16x8xf32>
    %c0_32 = arith.constant 0 : index
    %c0_33 = arith.constant 0 : index
    %c33 = arith.constant 33 : index
    %37 = vector.load %arg3[%c0_32, %c0_33, %c33] : memref<1x8x288xf32, #tpu.memory_space<vmem>>, vector<1x8x224xf32>
    %38 = vector.shape_cast %37 : vector<1x8x224xf32> to vector<8x224xf32>
    %cst_34 = arith.constant dense<0.000000e+00> : vector<16x224xf32>
    %39 = tpu.matmul %36, %38, %cst_34 {dimension_numbers = #tpu.dot_dimension_numbers<[1], [0], [0], [1], [0, 0, 1, 1], [], []>} : vector<16x8xf32>, vector<8x224xf32>, vector<16x224xf32> -> vector<16x224xf32>
    %40 = arith.addf %35, %39 : vector<16x224xf32>
    %c0_35 = arith.constant 0 : index
    %c64 = arith.constant 64 : index
    %41 = vector.load %arg1[%c0_35, %c64] : memref<16x72xf32, #tpu.memory_space<vmem>>, vector<16x8xf32>
    %c0_36 = arith.constant 0 : index
    %c0_37 = arith.constant 0 : index
    %c34 = arith.constant 34 : index
    %42 = vector.load %arg3[%c0_36, %c0_37, %c34] : memref<1x8x288xf32, #tpu.memory_space<vmem>>, vector<1x8x224xf32>
    %43 = vector.shape_cast %42 : vector<1x8x224xf32> to vector<8x224xf32>
    %cst_38 = arith.constant dense<0.000000e+00> : vector<16x224xf32>
    %44 = tpu.matmul %41, %43, %cst_38 {dimension_numbers = #tpu.dot_dimension_numbers<[1], [0], [0], [1], [0, 0, 1, 1], [], []>} : vector<16x8xf32>, vector<8x224xf32>, vector<16x224xf32> -> vector<16x224xf32>
    %45 = arith.addf %40, %44 : vector<16x224xf32>
    %c0_39 = arith.constant 0 : index
    %c0_40 = arith.constant 0 : index
    %46 = vector.load %arg2[%c0_39, %c0_40] : memref<16x1xf32, #tpu.memory_space<vmem>>, vector<16x1xf32>
    %47 = vector.broadcast %46 : vector<16x1xf32> to vector<16x224xf32>
    %48 = arith.addf %45, %47 : vector<16x224xf32>
    %c0_41 = arith.constant 0 : index
    %c0_42 = arith.constant 0 : index
    %c0_43 = arith.constant 0 : index
    %49 = vector.load %arg4[%c0_41, %c0_42, %c0_43] : memref<1x16x224xf32, #tpu.memory_space<vmem>>, vector<1x16x224xf32>
    %50 = vector.shape_cast %49 : vector<1x16x224xf32> to vector<16x224xf32>
    %51 = vector.shape_cast %48 : vector<16x224xf32> to vector<1x16x224xf32>
    tpu.vector_store %arg4[%c0_41, %c0_42, %c0_43], %51 {strides = array<i32>} : memref<1x16x224xf32, #tpu.memory_space<vmem>>, vector<1x16x224xf32>,
    return
  }
  func.func @transform_0(%arg0: i32) -> (i32, i32) {
    %c0_i32 = arith.constant 0 : i32
    %c0_i32_0 = arith.constant 0 : i32
    %c0_i32_1 = arith.constant 0 : i32
    return %c0_i32, %c0_i32_0 : i32, i32
  }
  func.func @transform_1(%arg0: i32) -> (i32, i32) {
    %c0_i32 = arith.constant 0 : i32
    %c0_i32_0 = arith.constant 0 : i32
    %c0_i32_1 = arith.constant 0 : i32
    return %c0_i32, %c0_i32_0 : i32, i32
  }
  func.func @transform_2(%arg0: i32) -> (i32, i32, i32) {
    %c0_i32 = arith.constant 0 : i32
    %c0_i32_0 = arith.constant 0 : i32
    %c0_i32_1 = arith.constant 0 : i32
    return %arg0, %c0_i32, %c0_i32_0 : i32, i32, i32
  }
  func.func @transform_3(%arg0: i32) -> (i32, i32, i32) {
    %c0_i32 = arith.constant 0 : i32
    %c0_i32_0 = arith.constant 0 : i32
    %c0_i32_1 = arith.constant 0 : i32
    return %arg0, %c0_i32, %c0_i32_0 : i32, i32, i32
  }
}

</mosaic_0001>

<bundles_post_ra>
// kernel: tpu_custom_call.1
= control target key start
LH: loop header
LB: loop body
LE: loop exit
PB: predicated region body
PF: predicated region fallthrough
CT: control target
= control target key end

     0   :  { %8 = vsyncpa [#allocation3], 0  ;;  %s1710_s0 = inlined_call_operand.vmem [shape: f32[16,72], index: 0, kind: input, shape index: {}]   ;;  %s1711_s1 = inlined_call_operand.vmem [shape: f32[16,1], index: 1, kind: input, shape index: {}]   ;;  %s1712_s2 = inlined_call_operand.hbm [shape: f32[2,8,288], index: 2, kind: input, shape index: {}]   ;;  %s1713_s3 = inlined_call_operand.hbm [shape: f32[2,16,224], index: 3, kind: output, shape index: {}]  }
   0x1   :  { %10 = vsyncpa [#allocation3 + $0x1], 0 }
   0x2   :  { %11 = vsyncpa [#allocation4], 0 }
   0x3   :  { %13 = vsyncpa [#allocation4 + $0x1], 0  ;;  %s1439_s12 = smov 0   ;;  %s1441_s13 = smov 0  }
   0x4   :  { %s1443_s14 = smov 0   ;;  %s1445_s15 = smov 0  }
   0x5 LB: > { %s1460_s16 = sadd.s32 4294967295, %s1397_s15   ;;  %s1168_s17 = sadd.s32 4294967294, %s1397_s15   ;;  %s1397_s15 = sphi %s1445_s15, %s1727_s15   ;;  %s1393_s14 = sphi %s1443_s14, %s1726_s14   ;;  %s1389_s13 = sphi %s1441_s13, %s1725_s13   ;;  %s1385_s12 = sphi %s1439_s12, %s1724_s12  }
   0x6   : > { %s1464_s18 = sadd.s32 1, %s1397_s15   ;;  %s68_s19 = sadd.s32 1, %s1393_s14 }
   0x7   : > { %s65_s20 = ssub.s32 %s1397_s15, %s1464_s18  ;;  %p75_p0 = scmp.ne.s32.totalorder %s1393_s14, %s1389_s13 }
   0x8   : > { %p66_p1 = scmp.eq.s32.totalorder %s65_s20, 0  ;;  %p76_p2 = scmp.eq.s32.totalorder %s1397_s15, 0 }
   0x9   : > { %p81_p3 = scmp.ne.s32.totalorder %s1389_s13, %s1385_s12  ;;  %p82_p4 = scmp.eq.s32.totalorder %s1460_s16, 0 }
   0xa   : > { %s1476_s21 = scalar_select %p66_p1, %s1393_s14, %s68_s19  }
   0xb   : > { %p77_p5 = por %p76_p2, %p75_p0  ;;  %p1478_p6 = por %p82_p4, %p81_p3 }
   0xc   : > { %p105_p7 = scmp.eq.s32.totalorder %s1460_s16, 1  ;;  %p111_p8 = scmp.eq.s32.totalorder %s1168_s17, 1 }
   0xd   : > { %p1247_p10 = scmp.lt.s32.totalorder %s1397_s15, 2  ;;  %s137_s25 = sand.u32 1, %s1393_s14  }
   0xe   : > { %p1485_p11 = por %p105_p7, %p75_p0  ;;  %p1489_p12 = por %p111_p8, %p81_p3 }
   0xf   : > { %s1233_s26 = smul.u32 384, %s1397_s15  ;;  %p1500_p13 = pnand %p1247_p10, %p77_p5 }
  0x10   : > { %s1716_s23 = scalar_select %p1485_p11, 1, 0 }
  0x11   : > { %s1717_s24 = scalar_select %p1489_p12, 1, 0 }
  0x12   : > { %s1232_s27 = smul.u32 24, %s137_s25  ;;  %s1498_s30 = scalar_lea.hbm %s1712_s2, %s1233_s26 }
  0x13   : > { %s138_s7 = scalar_lea.sflag [#allocation3], %s137_s25  ;;  %s1301_s8 = scalar_lea.hbm %s1498_s30, 384 }
  0x14   : > { %s141_s5 = scalar_lea.vmem [#allocation2], %s1232_s27  ;;  %p1302_p2 = scmp.ne.s32.totalorder %s1498_s30, %s1301_s8 }
  0x15   : > { %s149_s6 = sshll.u32 %s141_s5, 4  ;;  %p1303_p3 = pneg %p1500_p13  ;;  %s1505_s6 = int_to_ptr.vmem [resolvable:$true] %s149_s6 }
  0x16   : > { %s1306_s11 = scalar_lea.hbm %s1712_s2, 768  ;;  %p1307_p7 = scmp.lt.u32.totalorder %s1498_s30, %s1712_s2 }
  0x17   : > { %p1304_p4 = pnand %p1303_p3, %p1302_p2  ;;  %p1308_p8 = scmp.lt.u32.totalorder %s1306_s11, %s1301_s8 }
  0x18   : > { %p1310_p9 = scmp.lt.u32.totalorder %s1301_s8, %s1498_s30 }
  0x19   : > { %p1305_p5 = pneg %p1304_p4  ;;  %p1309_p10 = por %p1308_p8, %p1307_p7 }
  0x1b   : > { %p1311_p0 = por %p1310_p9, %p1309_p10 }
  0x1d   : > { %p1312_p1 = pnand %p1311_p0, %p1305_p5 }
  0x1f   : > { %1315 = shalt.err (!%p1312_p1)
}
  0x20   : > { %s1316_s20 = scalar_lea.vmem %s1505_s6, 384  ;;  %s1399_s25 = smov [#allocation2]  }
  0x21   : > { %p1317_p2 = scmp.ne.s32.totalorder %s1505_s6, %s1316_s20  ;;  %s1321_s26 = sshll.u32 %s1399_s25, 4  ;;  %s1322_s26 = int_to_ptr.vmem [resolvable:$false] %s1321_s26 }
  0x22   : > { %s1323_s27 = scalar_lea.vmem %s1322_s26, 768  ;;  %p1324_p11 = scmp.lt.s32.totalorder %s1505_s6, %s1322_s26 }
  0x23   : > { %p1319_p4 = pnand %p1317_p2, %p1303_p3  ;;  %p1325_p7 = scmp.lt.s32.totalorder %s1323_s27, %s1316_s20 }
  0x25   : > { %p1320_p12 = pneg %p1319_p4  ;;  %p1326_p8 = por %p1325_p7, %p1324_p11 }
  0x27   : > { %p1327_p9 = pnand %p1326_p8, %p1320_p12 }
  0x29   : > { %1330 = shalt.err (!%p1327_p9)
}
  0x2a   : > { %1242 = dma.hbm_to_vmem [thread:$0]  (!%p1500_p13), %s1498_s30, 384, %s1505_s6, %s138_s7  }
  0x2b   : > { %p1719_p0 = scmp.lt.s32.totalorder %s1397_s15, 3  ;;  %p1720_p1 = scmp.ge.s32.totalorder %s1397_s15, 1 }
  0x2d   : > { %p155_p3 = pnand %p1720_p1, %p1719_p0 }
  0x2e   : > { %s1538_s28 = sand.u32 (!%p155_p3), 1, %s1389_s13  }
  0x2f   : > { %158 = sbr.rel (%p155_p3) target bundleno = 470 (0x1d6), region = 32  ;;  %s161_s5 = scalar_lea.sflag (!%p155_p3), [#allocation3], %s1538_s28 }
  0x30   : > { %s1234_s29 = smul.u32 (!%p155_p3), 24, %s1538_s28 }
  0x32   : > { %s1542_s8 = scalar_lea.vmem (!%p155_p3), [#allocation2], %s1234_s29 }
  0x36   : > { %1376 = dma.done.wait (%p1478_p6), %s161_s5, 384  }
  0x37   : > { %1378 = vsyncadd (%p1478_p6), %s161_s5, 4294966912  ;;  %v1400_v0 = vmov 0.0   ;;  %v1551_v1 = vld [vmem:[%s1542_s8] sm:$0xff]  ;;  %s1401_s30 = smov 111   ;;  %s1402_s4 = smov 127   ;;  %v1556_v2 = vld [vmem:[%s1542_s8 + $0x8] sm:$0xff] }
  0x38   : > { %276 = vmatprep.mubr.f32.mxu1 %v1400_v0  ;;  %644 = vmatprep.mubr.f32.mxu0 %v1400_v0  ;;  %v1563_v3 = vld [vmem:[%s1710_s0] sm:$0xff]  ;;  %s1403_s7 = smov 96   ;;  %s1404_s9 = smov 120   ;;  %v1571_v4 = vld [vmem:[%s1710_s0 + $0x8] sm:$0xff]  ;;  %v1413_v6 = vmov 0   ;;  %vm203_vm0 = vcmask 1039360  }
  0x39   : > { %568 = vrot.lane.b32.xlu1 %v1551_v1, %s1401_s30  ;;  %199 = vrot.lane.b32.xlu0 %v1551_v1, %s1402_s4  ;;  %s1405_s17 = smov 110   ;;  %s1406_s19 = smov 88   ;;  %v857_v5 = vld [vmem:[%s1542_s8 + $0x10] sm:$0xff]  ;;  %v1061_v7 = vld [vmem:[%s1711_s1] sm:$0xff]  ;;  %vm572_vm1 = vcmask 908288   ;;  %vm207_vm2 = vcmask 64512  }
  0x3a   : > { %s1407_s20 = smov 126   ;;  %s1408_s25 = smov 112   ;;  %1299 = vset.pattern.permute.xlu0 %v1413_v6  ;;  %1300 = vset.pattern.permute.xlu1 %v1413_v6  ;;  %v1062_v8 = vld [vmem:[%s1711_s1 + $0x8] sm:$0xff]  ;;  %vm669_vm3 = vcmask 900096   ;;  %vm378_vm4 = vcmask 1031168   ;;  %vm766_vm5 = vcmask 785408  }
  0x3b   : > { %s1409_s26 = smov 80   ;;  %s1410_s27 = smov 95   ;;  %vm871_vm6 = vcmask 777216   ;;  %vm475_vm7 = vcmask 916480   ;;  %vm971_vm8 = vcmask 769024  }
  0x3c   : > { %s1411_s29 = smov 72   ;;  %s1412_s5 = smov 104  }
  0x3d   : > { %570 = vrot.lane.b32.xlu1 %v1556_v2, %s1401_s30  ;;  %201 = vrot.lane.b32.xlu0 %v1556_v2, %s1402_s4  ;;  %s1414_s8 = smov 94   ;;  %s1415_s30 = smov 64  }
  0x3e   : > { %p1721_p11 = scmp.ne.s32.totalorder %s1716_s23, 0 }
  0x41   : > { %564 = vrot.lane.b32.xlu1 %v1563_v3, %s1403_s7  ;;  %193 = vrot.lane.b32.xlu0 %v1563_v3, %s1404_s9 }
  0x45   : > { %665 = vrot.lane.b32.xlu1 %v1551_v1, %s1405_s17  ;;  %195 = vrot.lane.b32.xlu0 %v1571_v4, %s1404_s9 }
  0x49   : > { %661 = vrot.lane.b32.xlu1 %v1563_v3, %s1406_s19  ;;  %667 = vrot.lane.b32.xlu0 %v1556_v2, %s1405_s17  ;;  %s1197_s17 = sshll.u32 %s1460_s16, 9  ;;  %s1082_s16 = scalar_lea.sflag [#allocation4], %s1538_s28 }
  0x4d   : > { %374 = vrot.lane.b32.xlu1 %v1551_v1, %s1407_s20  ;;  %663 = vrot.lane.b32.xlu0 %v1571_v4, %s1406_s19 }
  0x51   : > { %762 = vrot.lane.b32.xlu1 %v1551_v1, %s1403_s7  ;;  %376 = vrot.lane.b32.xlu0 %v1556_v2, %s1407_s20 }
  0x55   : > { %370 = vrot.lane.b32.xlu1 %v1563_v3, %s1408_s25  ;;  %764 = vrot.lane.b32.xlu0 %v1556_v2, %s1403_s7 }
  0x59   : > { %372 = vrot.lane.b32.xlu1 %v1571_v4, %s1408_s25  ;;  %758 = vrot.lane.b32.xlu0 %v1563_v3, %s1409_s26 }
  0x5d   : > { %867 = vrot.lane.b32.xlu1 %v1556_v2, %s1410_s27  ;;  %760 = vrot.lane.b32.xlu0 %v1571_v4, %s1409_s26 }
  0x61   : > { %471 = vrot.lane.b32.xlu1 %v1551_v1, %s1408_s25  ;;  %869 = vrot.lane.b32.xlu0 %v857_v5, %s1410_s27 }
  0x65   : > { %865 = vrot.lane.b32.xlu1 %v1551_v1, %s1410_s27  ;;  %473 = vrot.lane.b32.xlu0 %v1556_v2, %s1408_s25  ;;  %s1665_s25 = scalar_lea.hbm %s1713_s3, %s1197_s17  ;;  %s1416_s27 = smov [#allocation5]  }
  0x69   : > { %858 = vrot.lane.b32.xlu1 %v1563_v3, %s1411_s29  ;;  %467 = vrot.lane.b32.xlu0 %v1563_v3, %s1412_s5 }
  0x6d   : > { %860 = vrot.lane.b32.xlu1 %v1571_v4, %s1411_s29  ;;  %469 = vrot.lane.b32.xlu0 %v1571_v4, %s1412_s5  ;;  %s1335_s29 = sshll.u32 %s1416_s27, 4  ;;  %s1336_s29 = int_to_ptr.vmem [resolvable:$false] %s1335_s29 }
  0x6e   : > { %s1337_s5 = scalar_lea.vmem %s1336_s29, 1024 }
  0x71   : > { %969 = vrot.lane.b32.xlu1 %v857_v5, %s1414_s8  ;;  %967 = vrot.lane.b32.xlu0 %v1556_v2, %s1414_s8 }
  0x75   : > { %965 = vrot.lane.b32.xlu0 %v1551_v1, %s1414_s8  ;;  %961 = vrot.lane.b32.xlu1 %v1563_v3, %s1415_s30 }
  0x79   : > { %566 = vrot.lane.b32.xlu0 %v1571_v4, %s1403_s7  ;;  %963 = vrot.lane.b32.xlu1 %v1571_v4, %s1415_s30  ;;  %s1173_s7 = sshll.u32 %s1538_s28, 5 }
  0x7a   : > { %s186_s10 = scalar_lea.vmem [#allocation5], %s1173_s7 }
  0x7b   : > { %s1095_s11 = sshll.u32 %s186_s10, 4  ;;  %s1659_s11 = int_to_ptr.vmem [resolvable:$true] %s1095_s11 }
  0x7c   : > { %s1331_s26 = scalar_lea.vmem %s1659_s11, 512  ;;  %p1338_p5 = scmp.lt.s32.totalorder %s1659_s11, %s1336_s29 }
  0x7d   : > { %1065 = vperm.xlu0 %1299, %v1061_v7   ;;  %1070 = vperm.xlu1 %1300, %v1062_v8   ;;  %p1332_p6 = scmp.ne.s32.totalorder %s1659_s11, %s1331_s26  ;;  %p1339_p10 = scmp.lt.s32.totalorder %s1337_s5, %s1331_s26 }
  0x7f   : > { %p1333_p12 = pnand %p1332_p6, %p1721_p11  ;;  %p1340_p2 = por %p1339_p10, %p1338_p5 }
  0x81   : > { %p1334_p13 = pneg %p1333_p12 }
  0x83   : > { %p1341_p4 = pnand %p1340_p2, %p1334_p13 }
  0xab   : > { %v569_v9 = vpop.permute.xlu1 %568  ;;  %v200_v10 = vpop.permute.xlu0 %199 }
  0xaf   : > { %v1609_v11 = vpop.permute.xlu1 %570  ;;  %v202_v12 = vpop.permute.xlu0 %201 }
  0xb0   : > { %212 = vmatprep.subr.mxu1 %v202_v12  ;;  %580 = vmatprep.subr.mxu0 %v1609_v11  ;;  %v204_v13 = vsel %vm203_vm0, %v200_v10, %v202_v12  ;;  %v1613_v14 = vsel %vm572_vm1, %v569_v9, %v1609_v11 }
  0xb1   : > { %213 = vmatpush1.msra.mxu1 %v204_v13  ;;  %581 = vmatpush1.msra.mxu0 %v1613_v14 }
  0xb2   : > { %293 = vmatprep.subr.mxu1 %v1556_v2 }
  0xb3   : > { %v565_v15 = vpop.permute.xlu1 %564  ;;  %v194_v16 = vpop.permute.xlu0 %193 }
  0xb4   : > { %1174 = vmatmul.mubr.msk.f32.vlgmr.msra.gmra.mrb[0].mxu1 %vm207_vm2, %v194_v16  ;;  %1182 = vmatmul.mubr.msk.f32.vlgmr.msra.gmra.mrb[0].mxu0 %vm207_vm2, %v565_v15 }
  0xb5   : > { %282 = vmatprep.mubr.f32.mxu1 %v1400_v0  ;;  %741 = vmatprep.mubr.f32.mxu0 %v1400_v0 }
  0xb6   : > { %294 = vmatpush1.msra.mxu1 %v1551_v1 }
  0xb7   : > { %v666_v17 = vpop.permute.xlu1 %665  ;;  %v196_v18 = vpop.permute.xlu0 %195 }
  0xb8   : > { %1175 = vmatmul.mubr.msk.f32.gmra.mrb[2].mxu1 %vm207_vm2, %v196_v18 }
  0xb9   : > { %357 = vmatprep.mubr.f32.mxu1 %v1400_v0 }
  0xbb   : > { %v662_v19 = vpop.permute.xlu1 %661  ;;  %v668_v20 = vpop.permute.xlu0 %667 }
  0xbc   : > { %v670_v21 = vsel %vm669_vm3, %v666_v17, %v668_v20  ;;  %677 = vmatprep.subr.mxu0 %v668_v20  ;;  %1176 = vmatmul.mubr.msk.f32.vlgmr.msra.gmra.mrb[0].mxu1 %vm207_vm2, %v1563_v3 }
  0xbd   : > { %678 = vmatpush1.msra.mxu0 %v670_v21  ;;  %363 = vmatprep.mubr.f32.mxu1 %v1400_v0 }
  0xbe   : > { %1184 = vmatmul.mubr.msk.f32.vlgmr.msra.gmra.mrb[0].mxu0 %vm207_vm2, %v662_v19 }
  0xbf   : > { %v375_v22 = vpop.permute.xlu1 %374  ;;  %v664_v23 = vpop.permute.xlu0 %663  ;;  %747 = vmatprep.mubr.f32.mxu0 %v1400_v0 }
  0xc0   : > { %1177 = vmatmul.mubr.msk.f32.gmra.mrb[2].mxu1 %vm207_vm2, %v1571_v4 }
  0xc1   : > { %450 = vmatprep.mubr.f32.mxu1 %v1400_v0 }
  0xc2   : > { %1185 = vmatmul.mubr.msk.f32.gmra.mrb[2].mxu0 %vm207_vm2, %v664_v23 }
  0xc3   : > { %v763_v24 = vpop.permute.xlu1 %762  ;;  %v377_v25 = vpop.permute.xlu0 %376  ;;  %838 = vmatprep.mubr.f32.mxu0 %v1400_v0 }
  0xc4   : > { %v379_v26 = vsel %vm378_vm4, %v375_v22, %v377_v25  ;;  %386 = vmatprep.subr.mxu1 %v377_v25 }
  0xc5   : > { %387 = vmatpush1.msra.mxu1 %v379_v26 }
  0xc7   : > { %v371_v27 = vpop.permute.xlu1 %370  ;;  %v765_v28 = vpop.permute.xlu0 %764 }
  0xc8   : > { %v767_v29 = vsel %vm766_vm5, %v763_v24, %v765_v28  ;;  %774 = vmatprep.subr.mxu0 %v765_v28  ;;  %1178 = vmatmul.mubr.msk.f32.vlgmr.msra.gmra.mrb[0].mxu1 %vm207_vm2, %v371_v27 }
  0xc9   : > { %775 = vmatpush1.msra.mxu0 %v767_v29  ;;  %456 = vmatprep.mubr.f32.mxu1 %v1400_v0 }
  0xcb   : > { %v373_v30 = vpop.permute.xlu1 %372  ;;  %v759_v31 = vpop.permute.xlu0 %758 }
  0xcc   : > { %1186 = vmatmul.mubr.msk.f32.vlgmr.msra.gmra.mrb[0].mxu0 %vm207_vm2, %v759_v31  ;;  %1179 = vmatmul.mubr.msk.f32.gmra.mrb[2].mxu1 %vm207_vm2, %v373_v30 }
  0xcd   : > { %844 = vmatprep.mubr.f32.mxu0 %v1400_v0  ;;  %547 = vmatprep.mubr.f32.mxu1 %v1400_v0 }
  0xcf   : > { %v868_v32 = vpop.permute.xlu1 %867  ;;  %v761_v33 = vpop.permute.xlu0 %760 }
  0xd0   : > { %1187 = vmatmul.mubr.msk.f32.gmra.mrb[2].mxu0 %vm207_vm2, %v761_v33 }
  0xd1   : > { %944 = vmatprep.mubr.f32.mxu0 %v1400_v0 }
  0xd3   : > { %v472_v34 = vpop.permute.xlu1 %471  ;;  %v870_v35 = vpop.permute.xlu0 %869 }
  0xd4   : > { %v873_v36 = vsel %vm871_vm6, %v868_v32, %v870_v35 }
  0xd5   : > { %880 = vmatprep.subr.mxu0 %v873_v36 }
  0xd7   : > { %v866_v37 = vpop.permute.xlu1 %865  ;;  %v474_v38 = vpop.permute.xlu0 %473 }
  0xd8   : > { %v872_v39 = vsel %vm871_vm6, %v866_v37, %v868_v32  ;;  %v476_v40 = vsel %vm475_vm7, %v472_v34, %v474_v38  ;;  %483 = vmatprep.subr.mxu1 %v474_v38 }
  0xd9   : > { %484 = vmatpush1.msra.mxu1 %v476_v40  ;;  %881 = vmatpush1.msra.mxu0 %v872_v39 }
  0xda   : > { %1198 = vmatprep.subr.mxu1 %v1609_v11 }
  0xdb   : > { %v859_v41 = vpop.permute.xlu1 %858  ;;  %v468_v42 = vpop.permute.xlu0 %467 }
  0xdc   : > { %1180 = vmatmul.mubr.msk.f32.vlgmr.msra.gmra.mrb[0].mxu1 %vm207_vm2, %v468_v42  ;;  %1188 = vmatmul.mubr.msk.f32.vlgmr.msra.gmra.mrb[0].mxu0 %vm207_vm2, %v859_v41 }
  0xdd   : > { %1199 = vmatpush1.msra.mxu1 %v1613_v14  ;;  %553 = vmatprep.mubr.f32.mxu1 %v1400_v0 }
  0xde   : > { %950 = vmatprep.mubr.f32.mxu0 %v1400_v0 }
  0xdf   : > { %v861_v43 = vpop.permute.xlu1 %860  ;;  %v470_v44 = vpop.permute.xlu0 %469 }
  0xe0   : > { %1181 = vmatmul.mubr.msk.f32.gmra.mrb[2].mxu1 %vm207_vm2, %v470_v44  ;;  %1189 = vmatmul.mubr.msk.f32.gmra.mrb[2].mxu0 %vm207_vm2, %v861_v43 }
  0xe1   : > { %1044 = vmatprep.mubr.f32.mxu0 %v1400_v0  ;;  %650 = vmatprep.mubr.f32.mxu1 %v1400_v0 }
  0xe3   : > { %v970_v45 = vpop.permute.xlu1 %969  ;;  %v968_v46 = vpop.permute.xlu0 %967 }
  0xe4   : > { %v973_v47 = vsel %vm971_vm8, %v968_v46, %v970_v45 }
  0xe5   : > { %980 = vmatprep.subr.mxu0 %v973_v47 }
  0xe7   : > { %v966_v48 = vpop.permute.xlu0 %965  ;;  %v962_v49 = vpop.permute.xlu1 %961 }
  0xe8   : > { %v972_v50 = vsel %vm971_vm8, %v966_v48, %v968_v46 }
  0xe9   : > { %981 = vmatpush1.msra.mxu0 %v972_v50 }
  0xea   : > { %1190 = vmatmul.mubr.msk.f32.vlgmr.msra.gmra.mrb[0].mxu0 %vm207_vm2, %v962_v49 }
  0xeb   : > { %v567_v51 = vpop.permute.xlu0 %566  ;;  %v964_v52 = vpop.permute.xlu1 %963  ;;  %1050 = vmatprep.mubr.f32.mxu0 %v1400_v0 }
  0xec   : > { %1183 = vmatmul.mubr.msk.f32.vlgmr.msra.gmra.mrb[2].mxu1 %vm207_vm2, %v567_v51 }
  0xee   : > { %1191 = vmatmul.mubr.msk.f32.gmra.mrb[2].mxu0 %vm207_vm2, %v964_v52 }
  0xfc   : > { %v1066_v56 = vpop.permute.xlu0 %1065  ;;  %v1071_v1 = vpop.permute.xlu1 %1070 }
 0x1af   : > { %v549_v53 = vpop.f32.mrb[0].mxu1 }
 0x1b0   : > { %v551_v54 = vpop.f32.mrb[1].mxu1 }
 0x1bd   : > { %v1046_v55 = vpop.f32.mrb[0].mxu0 }
 0x1be   : > { %v1200_v57 = vadd.f32 %v1046_v55, %v549_v53  ;;  %v1048_v58 = vpop.f32.mrb[1].mxu0 }
 0x1bf   : > { %v1201_v59 = vadd.f32 %v1048_v58, %v551_v54  ;;  %v652_v60 = vpop.f32.mrb[2].mxu1 }
 0x1c0   : > { %v1073_v61 = vadd.f32 %v1200_v57, %v1066_v56  ;;  %v654_v62 = vpop.f32.mrb[3].mxu1 }
 0x1c1   : > { %v1074_v63 = vadd.f32 %v1201_v59, %v1066_v56  ;;  %v1052_v0 = vpop.f32.mrb[2].mxu0 }
 0x1c2   : > { %1077 = vst [vmem:[%s186_s10] sm:$0xff] %v1073_v61  ;;  %v1202_v2 = vadd.f32 %v1052_v0, %v652_v60  ;;  %v1054_v3 = vpop.f32.mrb[3].mxu0 }
 0x1c3   : > { %1078 = vst.msk [vmem:[%s186_s10 + $0x8] sm:$0xff] %vm766_vm5, %v1074_v63  ;;  %v1203_v4 = vadd.f32 %v1054_v3, %v654_v62 }
 0x1c4   : > { %v1075_v5 = vadd.f32 %v1202_v2, %v1071_v1 }
 0x1c5   : > { %v1076_v6 = vadd.f32 %v1203_v4, %v1071_v1 }
 0x1c6   : > { %1079 = vst [vmem:[%s186_s10 + $0x10] sm:$0xff] %v1075_v5 }
 0x1c7   : > { %1080 = vst.msk [vmem:[%s186_s10 + $0x18] sm:$0xff] %vm766_vm5, %v1076_v6 }
 0x1c8   : > { %1344 = shalt.err (!%p1341_p4)
}
 0x1c9   : > { %s1345_s8 = scalar_lea.hbm %s1665_s25, 512  ;;  %s1349_s22 = scalar_lea.hbm %s1713_s3, 1024 }
 0x1ca   : > { %p1346_p7 = scmp.ne.s32.totalorder %s1665_s25, %s1345_s8  ;;  %p1350_p0 = scmp.lt.u32.totalorder %s1665_s25, %s1713_s3 }
 0x1cb   : > { %p1351_p1 = scmp.lt.u32.totalorder %s1349_s22, %s1345_s8  ;;  %p1353_p6 = scmp.lt.u32.totalorder %s1345_s8, %s1665_s25 }
 0x1cc   : > { %p1347_p8 = pnand %p1346_p7, %p1721_p11 }
 0x1cd   : > { %p1352_p3 = por %p1351_p1, %p1350_p0 }
 0x1ce   : > { %p1348_p9 = pneg %p1347_p8 }
 0x1cf   : > { %p1354_p12 = por %p1353_p6, %p1352_p3 }
 0x1d1   : > { %p1355_p13 = pnand %p1354_p12, %p1348_p9 }
 0x1d3   : > { %1358 = shalt.err (!%p1355_p13)
}
 0x1d4   : > { %s1417_s7 = smov 256   ;;  %s1418_s10 = smov 16  }
 0x1d5   : > { %1237 = dma.vmem_to_hbm [thread:$0]  (%p1721_p11), %s1659_s11, 512, %s1665_s25, %s1082_s16, %s1417_s7, %s1417_s7, %s1418_s10  }
 0x1d6 PF: > { %s1110_s17 = sand.u32 1, %s1385_s12   ;;  %p1722_p5 = scmp.ne.s32.totalorder %s1717_s24, 0 }
 0x1d7   : > { %p1723_p10 = scmp.ge.s32.totalorder %s1397_s15, 2  ;;  %s1111_s19 = scalar_lea.sflag [#allocation4], %s1110_s17 }
 0x1d9   : > { %p1244_p2 = pnand %p1723_p10, %p1722_p5 }
 0x1db   : > { %1380 = dma.done.wait (!%p1244_p2), %s1111_s19, 512  }
 0x1dc   : > { %1382 = vsyncadd (!%p1244_p2), %s1111_s19, 4294966784  ;;  %p16_p4 = scmp.ge.s32.totalorder %s1464_s18, 4   ;;  %s1724_s12 = smov %s1389_s13 }
 0x1dd   : > { %s1725_s13 = smov %s1393_s14  ;;  %s1726_s14 = smov %s1476_s21 }
 0x1de   : > { %s1727_s15 = smov %s1464_s18  ;;  %18 = sbr.rel (!%p16_p4) target bundleno = 5 (0x5), region = 77 }
 0x1e5   :  { %1116 = vsyncpa [#allocation3], 1 }
 0x1e6   :  { %1118 = vsyncpa [#allocation3 + $0x1], 1 }
 0x1e7   :  { %1119 = vsyncpa [#allocation4], 1 }
 0x1e8   :  { %1121 = vsyncpa [#allocation4 + $0x1], 1 }

</bundles_post_ra>
